<compile_context>
chip_gen: v6e
topology: v6e:2x2x1
jax: 0.10.0
libtpu: 0.0.40
codegen_flags: <defaults>
</compile_context>

<pallas_src>
import jax
import jax.numpy as jnp
from jax.experimental import pallas as pl
from jax.experimental.pallas import tpu as pltpu


def _round_up(x, m):
    return (x + m - 1) // m * m


def spd_edge_kernel(chunk_lo_ref, chunk_hi_ref,       # scalar prefetch (SMEM)
                    flat_idx_ref, emb_hi_ref, emb_lo_ref,
                    out_ref):
    """chunk_lo_ref / chunk_hi_ref: (grid_p,) i32   active E-chunk range per out tile
       flat_idx_ref:  (1, tile_e)            i32   sorted flat slot ids (-1 padding)
       emb_hi_ref:    (tile_e, out_dim_pad)  bf16  hi half of per-edge embeddings
       emb_lo_ref:    (tile_e, out_dim_pad)  bf16  lo (residual) half
       out_ref:       (tile_p, out_dim_pad)  f32   output tile (resident over k)"""
    p = pl.program_id(0)
    k = pl.program_id(1)
    tile_p = out_ref.shape[0]

    # Zero the resident output tile at the start of the reduction axis.
    @pl.when(k == 0)
    def _init():
        out_ref[...] = jnp.zeros_like(out_ref)

    lo = chunk_lo_ref[p]
    hi = chunk_hi_ref[p]

    # Only chunks that actually contain edges for this tile's row range do work.
    @pl.when(jnp.logical_and(k >= lo, k < hi))
    def _compute():
        row0 = p * tile_p
        # (tile_p, 1) iota column; broadcast-compare against (1, tile_e) slot ids.
        rows = jax.lax.broadcasted_iota(jnp.int32, (tile_p, 1), 0) + row0
        scatter_oh = (rows == flat_idx_ref[...]).astype(jnp.bfloat16)   # (tile_p, tile_e)

        acc = jnp.dot(scatter_oh, emb_hi_ref[...],
                      preferred_element_type=jnp.float32)
        acc = acc + jnp.dot(scatter_oh, emb_lo_ref[...],
                            preferred_element_type=jnp.float32)
        out_ref[...] += acc


def spd_edge_encoder(rel_idx, rel_val, emb_table, num_nodes, *,
                     tile_p=512, tile_e=1024):
    """Forward pass of SPDEdgeEncoder for a single graph with `num_nodes` nodes.

    Returns (out_idx (2, N*N) int32, out_val (N*N, out_dim) float32)."""
    E = int(rel_val.shape[0])
    in_dim, out_dim = emb_table.shape
    NN = num_nodes * num_nodes

    out_dim_pad = _round_up(out_dim, 128)

    # --- output tiling: multiple of 8; >= 2 parallel grid steps when possible (v7x) ---
    tile_p = _round_up(max(8, min(tile_p, _round_up(NN, 8))), 8)
    if _round_up(NN, tile_p) // tile_p < 2 and NN > 8:
        tile_p = _round_up((NN + 1) // 2, 8)
    nn_pad = _round_up(NN, tile_p)
    grid_p = nn_pad // tile_p

    # --- E tiling: lane-dense 128-multiple chunks ---
    tile_e = max(128, _round_up(min(tile_e, _round_up(max(E, 1), 128)), 128))
    e_pad = _round_up(max(E, 1), tile_e)
    grid_e = e_pad // tile_e

    # Flattened row-major (src, dst) slot index; sort edges by slot so each output tile
    # touches a contiguous chunk range.  Pad with -1 (never matches any row >= 0).
    flat = (rel_idx[0].astype(jnp.int32) * num_nodes
            + rel_idx[1].astype(jnp.int32))
    order = jnp.argsort(flat)
    flat_sorted = flat[order]
    val_sorted = rel_val.astype(jnp.int32)[order]
    flat_idx = jnp.full((1, e_pad), -1, jnp.int32).at[0, :E].set(flat_sorted)

    # Wrapper-side embedding gather; hi/lo bf16 split for near-f32-exact MXU matmuls.
    edge_emb = jnp.zeros((e_pad, out_dim_pad), jnp.float32)
    edge_emb = edge_emb.at[:E, :out_dim].set(
        emb_table.astype(jnp.float32)[val_sorted])
    emb_hi = edge_emb.astype(jnp.bfloat16)
    emb_lo = (edge_emb - emb_hi.astype(jnp.float32)).astype(jnp.bfloat16)

    # Per-output-tile active E-chunk range (scalar prefetch -> SMEM).
    bounds = jnp.arange(grid_p + 1, dtype=jnp.int32) * tile_p
    e_bounds = jnp.searchsorted(flat_sorted, bounds, side='left').astype(jnp.int32)
    chunk_lo = jnp.minimum(e_bounds[:-1] // tile_e, grid_e - 1).astype(jnp.int32)
    chunk_hi = ((e_bounds[1:] + tile_e - 1) // tile_e).astype(jnp.int32)

    def _chunk_idx(k, lo_ref, hi_ref, p):
        # Clamp into the active range so inactive steps re-present the same block
        # (their DMAs get elided) and the block index stays in bounds.
        lo = lo_ref[p]
        return jnp.clip(k, lo, jnp.maximum(lo, hi_ref[p] - 1))

    grid_spec = pltpu.PrefetchScalarGridSpec(
        num_scalar_prefetch=2,
        grid=(grid_p, grid_e),
        in_specs=[
            pl.BlockSpec((1, tile_e),
                         lambda p, k, lo, hi: (0, _chunk_idx(k, lo, hi, p))),
            pl.BlockSpec((tile_e, out_dim_pad),
                         lambda p, k, lo, hi: (_chunk_idx(k, lo, hi, p), 0)),
            pl.BlockSpec((tile_e, out_dim_pad),
                         lambda p, k, lo, hi: (_chunk_idx(k, lo, hi, p), 0)),
        ],
        out_specs=pl.BlockSpec((tile_p, out_dim_pad),
                               lambda p, k, lo, hi: (p, 0)),
    )

    # VMEM budget from the actual block footprint (double-buffered streams + resident
    # output tile), floored at 32 MiB and capped at 48 MiB (safe on v5e/v6e/v7x).
    block_bytes = (2 * 8 * tile_e * 4                       # flat_idx chunk (sublane-padded)
                   + 2 * 2 * tile_e * out_dim_pad * 2       # emb hi/lo chunks
                   + 2 * tile_p * out_dim_pad * 4)          # output tile
    vmem_limit = int(min(max(4 * block_bytes, 32 << 20), 48 << 20))

    flops = 2 * 2 * nn_pad * e_pad * out_dim_pad            # dense worst case
    bytes_accessed = int(flat_idx.size * 4 + 2 * emb_hi.size * 2
                         + nn_pad * out_dim_pad * 4)

    out_pad = pl.pallas_call(
        spd_edge_kernel,
        out_shape=jax.ShapeDtypeStruct((nn_pad, out_dim_pad), jnp.float32),
        grid_spec=grid_spec,
        compiler_params=pltpu.CompilerParams(
            dimension_semantics=("parallel", "arbitrary"),
            vmem_limit_bytes=vmem_limit),
        cost_estimate=pl.CostEstimate(flops=flops, transcendentals=0,
                                      bytes_accessed=bytes_accessed),
    )(chunk_lo, chunk_hi, flat_idx, emb_hi, emb_lo)

    # TODO(synk): when out_dim << 128, fold row blocks into the lane dim (or emit bf16)
    # to avoid the out_dim -> 128 writeback inflation.
    out_val = out_pad[:NN, :out_dim]

    # Glue (plain JAX): full-graph edge index, row-major (src, dst), matching the
    # kernel's flattened output-slot ordering (== torch_sparse.coalesce ordering).
    src = jnp.repeat(jnp.arange(num_nodes, dtype=jnp.int32), num_nodes)
    dst = jnp.tile(jnp.arange(num_nodes, dtype=jnp.int32), num_nodes)
    out_idx = jnp.stack([src, dst], axis=0)

    # TODO(synk): batchnorm/layernorm branches (default False) not implemented in-kernel.
    return out_idx, out_val


if __name__ == "__main__":
    key = jax.random.PRNGKey(0)
    N = 8        # nodes in the (single) graph
    E = 12       # number of spd edges provided in the batch
    in_dim = 8   # number of SPD distance buckets (embedding rows)
    out_dim = 32

    k1, k2, k3 = jax.random.split(key, 3)
    emb_table = jax.random.normal(k1, (in_dim, out_dim), dtype=jnp.float32)  # nn.Embedding weight
    rel_idx = jax.random.randint(k2, (2, E), 0, N, dtype=jnp.int32)          # batch['spd_index']
    rel_val = jax.random.randint(k3, (E,), 0, in_dim, dtype=jnp.int32)       # batch['spd_val']

    out_idx, out_val = spd_edge_encoder(rel_idx, rel_val, emb_table, N)
    jax.block_until_ready(out_val)

    # Plain-JAX reference (embedding lookup + coalesce-add).  The kernel uses a hi/lo
    # bf16 split of the embedding table (near-f32 exact), so compare at 5e-4 abs tol.
    ref = jnp.zeros((N * N, out_dim), jnp.float32).at[
        rel_idx[0] * N + rel_idx[1]
    ].add(emb_table[rel_val])
    assert out_idx.shape == (2, N * N)
    assert out_val.shape == (N * N, out_dim)
    assert jnp.allclose(out_val, ref, atol=5e-4), "mismatch vs reference"

    print("KERNEL_OK")
</pallas_src>

<mosaic_0001>
module attributes {stable_mosaic.version = 11 : i64} {
  func.func @spd_edge_kernel(%arg0: i32, %arg1: i32, %arg2: memref<2xi32, #tpu.memory_space<smem>>, %arg3: memref<2xi32, #tpu.memory_space<smem>>, %arg4: memref<1x128xi32, #tpu.memory_space<vmem>>, %arg5: memref<128x128xbf16, #tpu.memory_space<vmem>>, %arg6: memref<128x128xbf16, #tpu.memory_space<vmem>>, %arg7: memref<32x128xf32, #tpu.memory_space<vmem>>) attributes {dimension_semantics = [#tpu.dimension_semantics<parallel>, #tpu.dimension_semantics<arbitrary>], iteration_bounds = array<i64: 2, 1>, scalar_prefetch = 2 : i64, scratch_operands = 0 : i64, tpu.core_type = #tpu.core_type<tc>, window_params = [{transform_indices = @transform_0, window_bounds = array<i64: 1, 128>}, {transform_indices = @transform_1, window_bounds = array<i64: 128, 128>}, {transform_indices = @transform_2, window_bounds = array<i64: 128, 128>}, {transform_indices = @transform_3, window_bounds = array<i64: 32, 128>}]} {
    %c0_i32 = arith.constant 0 : i32
    %0 = arith.cmpi eq, %arg1, %c0_i32 : i32
    %1 = arith.extui %0 : i1 to i32
    %c0_i32_0 = arith.constant 0 : i32
    %2 = arith.cmpi ne, %1, %c0_i32_0 : i32
    scf.if %2 {
      %cst = arith.constant 0.000000e+00 : f32
      %12 = vector.broadcast %cst : f32 to vector<32x128xf32>
      %c0 = arith.constant 0 : index
      %c0_2 = arith.constant 0 : index
      %13 = vector.load %arg7[%c0, %c0_2] : memref<32x128xf32, #tpu.memory_space<vmem>>, vector<32x128xf32>
      tpu.vector_store %arg7[%c0, %c0_2], %12 {strides = array<i32>} : memref<32x128xf32, #tpu.memory_space<vmem>>, vector<32x128xf32>,
    } else {
    }
    %3 = arith.index_cast %arg0 : i32 to index
    %4 = memref.load %arg2[%3] : memref<2xi32, #tpu.memory_space<smem>>
    %5 = arith.index_cast %arg0 : i32 to index
    %6 = memref.load %arg3[%5] : memref<2xi32, #tpu.memory_space<smem>>
    %7 = arith.cmpi sge, %arg1, %4 : i32
    %8 = arith.cmpi slt, %arg1, %6 : i32
    %9 = arith.andi %7, %8 : i1
    %10 = arith.extui %9 : i1 to i32
    %c0_i32_1 = arith.constant 0 : i32
    %11 = arith.cmpi ne, %10, %c0_i32_1 : i32
    scf.if %11 {
      %c32_i32 = arith.constant 32 : i32
      %12 = arith.muli %arg0, %c32_i32 : i32
      %13 = tpu.iota {dimensions = array<i32: 0>} : vector<32x1xi32>
      %14 = vector.broadcast %12 : i32 to vector<32x1xi32>
      %15 = arith.addi %13, %14 : vector<32x1xi32>
      %c0 = arith.constant 0 : index
      %c0_2 = arith.constant 0 : index
      %16 = vector.load %arg4[%c0, %c0_2] : memref<1x128xi32, #tpu.memory_space<vmem>>, vector<1x128xi32>
      %17 = vector.broadcast %15 : vector<32x1xi32> to vector<32x128xi32>
      %18 = vector.broadcast %16 : vector<1x128xi32> to vector<32x128xi32>
      %19 = arith.cmpi eq, %17, %18 : vector<32x128xi32>
      %20 = arith.extui %19 : vector<32x128xi1> to vector<32x128xi32>
      %21 = arith.sitofp %20 : vector<32x128xi32> to vector<32x128xf32>
      %22 = arith.truncf %21 : vector<32x128xf32> to vector<32x128xbf16>
      %c0_3 = arith.constant 0 : index
      %c0_4 = arith.constant 0 : index
      %23 = vector.load %arg5[%c0_3, %c0_4] : memref<128x128xbf16, #tpu.memory_space<vmem>>, vector<128x128xbf16>
      %cst = arith.constant dense<0.000000e+00> : vector<32x128xf32>
      %24 = tpu.matmul %22, %23, %cst {dimension_numbers = #tpu.dot_dimension_numbers<[1], [0], [0], [1], [0, 0, 1, 1], [], []>} : vector<32x128xbf16>, vector<128x128xbf16>, vector<32x128xf32> -> vector<32x128xf32>
      %c0_5 = arith.constant 0 : index
      %c0_6 = arith.constant 0 : index
      %25 = vector.load %arg6[%c0_5, %c0_6] : memref<128x128xbf16, #tpu.memory_space<vmem>>, vector<128x128xbf16>
      %cst_7 = arith.constant dense<0.000000e+00> : vector<32x128xf32>
      %26 = tpu.matmul %22, %25, %cst_7 {dimension_numbers = #tpu.dot_dimension_numbers<[1], [0], [0], [1], [0, 0, 1, 1], [], []>} : vector<32x128xbf16>, vector<128x128xbf16>, vector<32x128xf32> -> vector<32x128xf32>
      %27 = arith.addf %24, %26 : vector<32x128xf32>
      %c0_8 = arith.constant 0 : index
      %c0_9 = arith.constant 0 : index
      %28 = vector.load %arg7[%c0_8, %c0_9] : memref<32x128xf32, #tpu.memory_space<vmem>>, vector<32x128xf32>
      %29 = arith.addf %28, %27 : vector<32x128xf32>
      %c0_10 = arith.constant 0 : index
      %c0_11 = arith.constant 0 : index
      %30 = vector.load %arg7[%c0_10, %c0_11] : memref<32x128xf32, #tpu.memory_space<vmem>>, vector<32x128xf32>
      tpu.vector_store %arg7[%c0_10, %c0_11], %29 {strides = array<i32>} : memref<32x128xf32, #tpu.memory_space<vmem>>, vector<32x128xf32>,
    } else {
    }
    return
  }
  func.func @transform_0(%arg0: i32, %arg1: i32, %arg2: memref<2xi32, #tpu.memory_space<smem>>, %arg3: memref<2xi32, #tpu.memory_space<smem>>) -> (i32, i32) {
    %0 = arith.index_cast %arg0 : i32 to index
    %1 = memref.load %arg2[%0] : memref<2xi32, #tpu.memory_space<smem>>
    %2 = arith.index_cast %arg0 : i32 to index
    %3 = memref.load %arg3[%2] : memref<2xi32, #tpu.memory_space<smem>>
    %c1_i32 = arith.constant 1 : i32
    %4 = arith.subi %3, %c1_i32 : i32
    %5 = arith.maxsi %1, %4 : i32
    %6 = arith.maxsi %1, %arg1 : i32
    %7 = arith.minsi %5, %6 : i32
    %c0_i32 = arith.constant 0 : i32
    %c0_i32_0 = arith.constant 0 : i32
    return %c0_i32, %7 : i32, i32
  }
  func.func @transform_1(%arg0: i32, %arg1: i32, %arg2: memref<2xi32, #tpu.memory_space<smem>>, %arg3: memref<2xi32, #tpu.memory_space<smem>>) -> (i32, i32) {
    %0 = arith.index_cast %arg0 : i32 to index
    %1 = memref.load %arg2[%0] : memref<2xi32, #tpu.memory_space<smem>>
    %2 = arith.index_cast %arg0 : i32 to index
    %3 = memref.load %arg3[%2] : memref<2xi32, #tpu.memory_space<smem>>
    %c1_i32 = arith.constant 1 : i32
    %4 = arith.subi %3, %c1_i32 : i32
    %5 = arith.maxsi %1, %4 : i32
    %6 = arith.maxsi %1, %arg1 : i32
    %7 = arith.minsi %5, %6 : i32
    %c0_i32 = arith.constant 0 : i32
    %c0_i32_0 = arith.constant 0 : i32
    return %7, %c0_i32 : i32, i32
  }
  func.func @transform_2(%arg0: i32, %arg1: i32, %arg2: memref<2xi32, #tpu.memory_space<smem>>, %arg3: memref<2xi32, #tpu.memory_space<smem>>) -> (i32, i32) {
    %0 = arith.index_cast %arg0 : i32 to index
    %1 = memref.load %arg2[%0] : memref<2xi32, #tpu.memory_space<smem>>
    %2 = arith.index_cast %arg0 : i32 to index
    %3 = memref.load %arg3[%2] : memref<2xi32, #tpu.memory_space<smem>>
    %c1_i32 = arith.constant 1 : i32
    %4 = arith.subi %3, %c1_i32 : i32
    %5 = arith.maxsi %1, %4 : i32
    %6 = arith.maxsi %1, %arg1 : i32
    %7 = arith.minsi %5, %6 : i32
    %c0_i32 = arith.constant 0 : i32
    %c0_i32_0 = arith.constant 0 : i32
    return %7, %c0_i32 : i32, i32
  }
  func.func @transform_3(%arg0: i32, %arg1: i32, %arg2: memref<2xi32, #tpu.memory_space<smem>>, %arg3: memref<2xi32, #tpu.memory_space<smem>>) -> (i32, i32) {
    %c0_i32 = arith.constant 0 : i32
    %c0_i32_0 = arith.constant 0 : i32
    return %arg0, %c0_i32 : i32, i32
  }
}

</mosaic_0001>

<bundles_post_ra>
// kernel: tpu_custom_call.1
= control target key start
LH: loop header
LB: loop body
LE: loop exit
PB: predicated region body
PF: predicated region fallthrough
CT: control target
= control target key end

     0   :  { %s1305_s18 = smov [#allocation3]   ;;  %s1766_s0 = inlined_call_operand.hbm [shape: s32[2], index: 0, kind: input, shape index: {}]   ;;  %s1767_s2 = inlined_call_operand.vmem [shape: s32[1,128], index: 2, kind: input, shape index: {}]   ;;  %s1768_s3 = inlined_call_operand.hbm [shape: bf16[128,128], index: 3, kind: input, shape index: {}]   ;;  %s1769_s4 = inlined_call_operand.hbm [shape: bf16[128,128], index: 4, kind: input, shape index: {}]   ;;  %s1770_s5 = inlined_call_operand.hbm [shape: f32[64,128], index: 5, kind: output, shape index: {}]   ;;  %s1771_s1 = inlined_call_operand.vmem [shape: s32[2], index: 1, kind: input, shape index: {}]  }
   0x1   :  { %1786 = sst [smem:[#allocation30_spill]] %s1770_s5  ;;  %s12_s23 = sshll.u32 %s1771_s1, 4  ;;  %s13_s23 = int_to_ptr.vmem [resolvable:$true] %s12_s23 }
   0x2   :  { %11 = dma.hbm_to_smem %s1766_s0, 16, %s1305_s18, [#allocation2] }
   0x3   :  { %s1101_s24 = scalar_lea.vmem %s13_s23, 16  ;;  %p1106_p1 = scmp.lt.s32.totalorder %s13_s23, %s13_s23 }
   0x4   :  { %p1102_p0 = scmp.ne.s32.totalorder %s13_s23, %s1101_s24  ;;  %p1107_p2 = scmp.lt.s32.totalorder %s1101_s24, %s1101_s24 }
   0x6   :  { %p1108_p3 = por %p1107_p2, %p1106_p1 }
   0x8   :  { %p1109_p4 = pnand %p1108_p3, %p1102_p0 }
   0xa   :  { %1112 = shalt.err (!%p1109_p4)  }
   0xb   :  { %s1306_s25 = smov [#allocation4]  }
   0xc   :  { %15 = dma.vmem_to_smem %s13_s23, 16, %s1306_s25, [#allocation2] }
   0xd   :  { %1243 = dma.done.wait [#allocation2], 32 }
   0xe   :  { %1244 = vsyncadd [#allocation2], 4294967264 }
   0xf   :  { %17 = sfence }
  0x10   :  { %18 = vsyncpa [#allocation6], 0 }
  0x11   :  { %20 = vsyncpa [#allocation6 + $0x1], 0 }
  0x12   :  { %21 = vsyncpa [#allocation9], 0 }
  0x13   :  { %23 = vsyncpa [#allocation9 + $0x1], 0 }
  0x14   :  { %24 = vsyncpa [#allocation7], 0 }
  0x15   :  { %26 = vsyncpa [#allocation7 + $0x1], 0  ;;  %s1352_s0 = smov 0   ;;  %s1354_s1 = smov 0  }
  0x16   :  { %s1356_s26 = smov 0   ;;  %s1358_s27 = smov 0  }
  0x17   :  { %s1360_s28 = smov 0   ;;  %s1362_s29 = smov 0  }
  0x18   :  { %s1364_s30 = smov 0   ;;  %s1366_s6 = smov 0  }
  0x19   :  { %s1368_s7 = smov 0   ;;  %s1370_s8 = smov 0  }
  0x1a   :  { %s1372_s9 = smov 0   ;;  %s1374_s10 = smov 0  }
  0x1b LB: > { %1787 = sst [smem:[#allocation23_spill]] %s1267_s26  ;;  %s44_s11 = sadd.s32 1, %s1299_s9  ;;  %s1303_s10 = sphi %s1374_s10, %s32_s10   ;;  %s1299_s9 = sphi %s1372_s9, %s1827_s9   ;;  %s1295_s8 = sphi %s1370_s8, %s1826_s8   ;;  %s1291_s7 = sphi %s1368_s7, %s1836_s7   ;;  %s1287_s6 = sphi %s1366_s6, %s1835_s6   ;;  %s1283_s30 = sphi %s1364_s30, %s1834_s30   ;;  %s1279_s29 = sphi %s1362_s29, %s1833_s29   ;;  %s1275_s28 = sphi %s1360_s28, %s1832_s28   ;;  %s1271_s27 = sphi %s1358_s27, %s1831_s27   ;;  %s1267_s26 = sphi %s1356_s26, %s1830_s26   ;;  %s1263_s1 = sphi %s1354_s1, %s1829_s1   ;;  %s1259_s0 = sphi %s1352_s0, %s1828_s0  }
  0x1c   : > { %1788 = sst [smem:[#allocation24_spill]] %s1291_s7  ;;  %p46_p5 = scmp.ge.s32.totalorder %s44_s11, 2 }
  0x1d   : > { %1789 = sst [smem:[#allocation25_spill]] %s1299_s9  ;;  %s1772_s14 = sadd.s32 4294967295, %s1303_s10  }
  0x1e   : > { %s92_s12 = sld [smem:[#allocation3 + %s1299_s9]]  ;;  %s1838_s11 = smov (%p46_p5, %s44_s11), 0 }
  0x1f   : > { %s93_s13 = sld [smem:[#allocation4 + %s1299_s9]]  ;;  %p120_p6 = scmp.ne.s32.totalorder %s1291_s7, %s1287_s6 }
  0x20   : > { %1790 = sst [smem:[#allocation26_spill]] %s1838_s11  ;;  %p126_p7 = scmp.ne.s32.totalorder %s1287_s6, %s1283_s30 }
  0x21   : > { %s101_s16 = sld [smem:[#allocation3 + %s1838_s11]]  ;;  %p1423_p8 = scmp.eq.s32.totalorder %s1772_s14, 0 }
  0x22   : > { %s102_s18 = sld [smem:[#allocation4 + %s1838_s11]]  ;;  %p121_p10 = scmp.eq.s32.totalorder %s1303_s10, 0 }
  0x23   : > { %p1431_p12 = por %p1423_p8, %p126_p7  ;;  %s136_s22 = sld [smem:[#allocation3 + %s1299_s9]] }
  0x24   : > { %p97_p9 = scmp.gt.s32.totalorder %s92_s12, 0  ;;  %s137_s24 = sld [smem:[#allocation4 + %s1299_s9]] }
  0x25   : > { %s819_s19 = sadd.s32 4294967295, %s93_s13  ;;  %s113_s30 = sadd.s32 1, %s1291_s7 }
  0x26   : > { %p95_p11 = scmp.gt.s32.totalorder %s92_s12, %s819_s19  ;;  %s145_s13 = sld [smem:[#allocation3 + %s1838_s11]] }
  0x27   : > { %s1792_s20 = scalar_select %p1431_p12, 1, 0 }
  0x28   : > { %s98_s21 = scalar_select %p97_p9, %s92_s12, 0 }
  0x29   : > { %s1840_s12 = smov (!%p95_p11, %s92_s12), %s819_s19  ;;  %p106_p13 = scmp.gt.s32.totalorder %s101_s16, 0 }
  0x2a   : > { %p99_p0 = scmp.lt.s32.totalorder %s1840_s12, %s98_s21  ;;  %s820_s23 = sadd.s32 4294967295, %s102_s18 }
  0x2b   : > { %p104_p1 = scmp.gt.s32.totalorder %s101_s16, %s820_s23  ;;  %p1444_p3 = por %p121_p10, %p120_p6 }
  0x2c   : > { %s1842_s12 = smov (!%p99_p0, %s1840_s12), %s98_s21  ;;  %s821_s15 = sadd.s32 4294967295, %s137_s24 }
  0x2d   : > { %s105_s25 = scalar_select %p104_p1, %s101_s16, %s820_s23 }
  0x2e   : > { %s1844_s16 = smov (!%p106_p13, %s101_s16), 0  ;;  %s146_s18 = sld [smem:[#allocation4 + %s1838_s11]] }
  0x2f   : > { %p108_p2 = scmp.lt.s32.totalorder %s105_s25, %s1844_s16  ;;  %p139_p4 = scmp.gt.s32.totalorder %s136_s22, %s821_s15 }
  0x30   : > { %p141_p5 = scmp.gt.s32.totalorder %s136_s22, 0  ;;  %s157_s23 = sadd.s32 1, %s1279_s29 }
  0x31   : > { %s1846_s25 = smov (!%p108_p2, %s105_s25), %s1844_s16  ;;  %p150_p9 = scmp.gt.s32.totalorder %s145_s13, 0 }
  0x32   : > { %s110_s21 = ssub.s32 %s1842_s12, %s1846_s25  ;;  %p170_p6 = scmp.ne.s32.totalorder %s1275_s28, %s1271_s27 }
  0x33   : > { %p111_p7 = scmp.eq.s32.totalorder %s110_s21, 0  ;;  %s183_s27 = sadd.s32 1, %s1267_s26 }
  0x34   : > { %s140_s14 = scalar_select %p139_p4, %s136_s22, %s821_s15 }
  0x35   : > { %s1451_s5 = scalar_select %p111_p7, %s1291_s7, %s113_s30  }
  0x36   : > { %s1848_s22 = smov (!%p141_p5, %s136_s22), 0  ;;  %s822_s24 = sadd.s32 4294967295, %s146_s18 }
  0x37   : > { %1794 = sst [smem:[#allocation27_spill]] %s1451_s5  ;;  %p143_p11 = scmp.lt.s32.totalorder %s140_s14, %s1848_s22 }
  0x38   : > { %p148_p13 = scmp.gt.s32.totalorder %s145_s13, %s822_s24  ;;  %p1457_p0 = por %p170_p6, %p1423_p8 }
  0x39   : > { %s151_s16 = scalar_select %p150_p9, %s145_s13, 0 }
  0x3a   : > { %s1850_s14 = smov (!%p143_p11, %s140_s14), %s1848_s22  ;;  %s1852_s13 = smov (!%p148_p13, %s145_s13), %s822_s24 }
  0x3b   : > { %s1795_s12 = scalar_select %p1457_p0, 1, 0 }
  0x3c   : > { %s180_s15 = ssub.s32 %s1299_s9, %s1838_s11  ;;  %p152_p1 = scmp.lt.s32.totalorder %s1852_s13, %s151_s16 }
  0x3d   : > { %p181_p2 = scmp.eq.s32.totalorder %s180_s15, 0  ;;  %p193_p4 = scmp.ne.s32.totalorder %s1267_s26, %s1263_s1 }
  0x3e   : > { %s1854_s13 = smov (!%p152_p1, %s1852_s13), %s151_s16  ;;  %s1797_s25 = sadd.s32 4294967295, %s1303_s10  }
  0x3f   : > { %s1467_s17 = scalar_select %p181_p2, %s1267_s26, %s183_s27  }
  0x40   : > { %s154_s22 = ssub.s32 %s1850_s14, %s1854_s13  ;;  %p194_p8 = scmp.eq.s32.totalorder %s1797_s25, 1 }
  0x41   : > { %1796 = sst [smem:[#allocation28_spill]] %s1467_s17  ;;  %p155_p5 = scmp.eq.s32.totalorder %s154_s22, 0 }
  0x42   : > { %p199_p7 = scmp.ne.s32.totalorder %s1263_s1, %s1259_s0  ;;  %p1473_p9 = por %p194_p8, %p193_p4 }
  0x43   : > { %s1799_s18 = sadd.s32 4294967294, %s1303_s10   ;;  %p1778_p1 = scmp.lt.s32.totalorder %s1303_s10, 2 }
  0x44   : > { %s1798_s30 = scalar_select %p1473_p9, 1, 0 }
  0x45   : > { %p200_p6 = scmp.eq.s32.totalorder %s1799_s18, 1  ;;  %s1774_s14 = sand.u32 1, %s1291_s7  }
  0x46   : > { %s1480_s21 = scalar_select %p155_p5, %s1279_s29, %s157_s23  }
  0x47   : > { %p1482_p11 = por %p200_p6, %p199_p7  ;;  %p164_p2 = scmp.ne.s32.totalorder %s1279_s29, %s1275_s28 }
  0x48   : > { %1800 = sst [smem:[#allocation29_spill]] %s1480_s21  ;;  %s825_s13 = sshll.u32 %s1774_s14, 6 }
  0x49   : > { %s1801_s24 = scalar_select %p1482_p11, 1, 0 }
  0x4a   : > { %p1497_p4 = pnand %p1778_p1, %p1444_p3  ;;  %p1516_p8 = por %p164_p2, %p121_p10 }
  0x4b   : > { %s938_s15 = scalar_select %p1444_p3, [#allocation3], [#allocation11] }
  0x4c   : > { %s939_s23 = scalar_select %p1444_p3, %s1299_s9, 0 }
  0x4d   : > { %s1856_s15 = smov (!%p1778_p1, %s938_s15), [#allocation15]  ;;  %s248_s14 = scalar_lea.vmem [#allocation5], %s825_s13 }
  0x4e   : > { %s1858_s23 = smov (!%p1778_p1, %s939_s23), 0  ;;  %s264_s11 = sshll.u32 %s248_s14, 4  ;;  %s1520_s11 = int_to_ptr.vmem [resolvable:$true] %s264_s11 }
  0x4f   : > { %s940_s27 = scalar_select %p1444_p3, [#allocation4], [#allocation12] }
  0x50   : > { %s249_s22 = sld [smem:[%s1856_s15 + %s1858_s23]]  ;;  %p1533_p7 = pnand %p1778_p1, %p1516_p8 }
  0x51   : > { %s1860_s27 = smov (!%p1778_p1, %s940_s27), [#allocation16] }
  0x52   : > { %s1803_s25 = scalar_select %p1516_p8, 1, 0 }
  0x53   : > { %s250_s18 = sld [smem:[%s1860_s27 + %s1858_s23]] }
  0x54   : > { %s943_s19 = scalar_select %p1516_p8, [#allocation3], [#allocation13] }
  0x55   : > { %s944_s21 = scalar_select %p1516_p8, %s1299_s9, 0 }
  0x56   : > { %p254_p5 = scmp.gt.s32.totalorder %s249_s22, 0  ;;  %s1864_s19 = smov (!%p1778_p1, %s943_s19), [#allocation17] }
  0x57   : > { %s1804_s14 = scalar_select %p1533_p7, 1, 0 }
  0x58   : > { %s255_s15 = scalar_select %p254_p5, %s249_s22, 0 }
  0x59   : > { %s826_s5 = sadd.s32 4294967295, %s250_s18  ;;  %s1866_s21 = smov (!%p1778_p1, %s944_s21), 0 }
  0x5a   : > { %p252_p10 = scmp.gt.s32.totalorder %s249_s22, %s826_s5  ;;  %s1542_s13 = sld [smem:[%s1864_s19 + %s1866_s21]] }
  0x5b   : > { %s1805_s9 = sand.u32 1, %s1291_s7  }
  0x5c   : > { %s1862_s22 = smov (!%p252_p10, %s249_s22), %s826_s5  ;;  %s1553_s17 = scalar_lea.sflag [#allocation6], %s1805_s9 }
  0x5d   : > { %p256_p3 = scmp.lt.s32.totalorder %s1862_s22, %s255_s15  ;;  %p1115_p10 = pneg %p1497_p4 }
  0x5f   : > { %s1868_s22 = smov (!%p256_p3, %s1862_s22), %s255_s15  ;;  %s1118_s15 = scalar_lea.hbm %s1768_s3, 1024 }
  0x60   : > { %s875_s23 = sshll.u32 %s1868_s22, 10 }
  0x61   : > { %s1548_s18 = scalar_lea.hbm %s1768_s3, %s875_s23 }
  0x62   : > { %s1113_s26 = scalar_lea.hbm %s1548_s18, 1024  ;;  %p1119_p1 = scmp.lt.s32.totalorder %s1548_s18, %s1768_s3 }
  0x63   : > { %p1114_p5 = scmp.ne.s32.totalorder %s1548_s18, %s1113_s26  ;;  %p1120_p6 = scmp.lt.s32.totalorder %s1118_s15, %s1113_s26 }
  0x65   : > { %p1116_p3 = pnand %p1115_p10, %p1114_p5  ;;  %p1121_p11 = por %p1120_p6, %p1119_p1 }
  0x67   : > { %p1117_p13 = pneg %p1116_p3 }
  0x69   : > { %p1122_p2 = pnand %p1121_p11, %p1117_p13 }
  0x6b   : > { %1125 = shalt.err (!%p1122_p2)
}
  0x6c   : > { %s1126_s9 = scalar_lea.vmem %s1520_s11, 1024  ;;  %s1307_s5 = smov [#allocation5]  }
  0x6d   : > { %p1127_p9 = scmp.ne.s32.totalorder %s1520_s11, %s1126_s9  ;;  %s1131_s7 = sshll.u32 %s1307_s5, 4  ;;  %s1132_s7 = int_to_ptr.vmem [resolvable:$false] %s1131_s7 }
  0x6e   : > { %s1133_s22 = scalar_lea.vmem %s1132_s7, 2048  ;;  %p1134_p3 = scmp.lt.s32.totalorder %s1520_s11, %s1132_s7 }
  0x6f   : > { %p1129_p0 = pnand %p1127_p9, %p1115_p10  ;;  %p1135_p12 = scmp.lt.s32.totalorder %s1133_s22, %s1126_s9 }
  0x71   : > { %p1130_p5 = pneg %p1129_p0  ;;  %p1136_p7 = por %p1135_p12, %p1134_p3 }
  0x73   : > { %p1137_p8 = pnand %p1136_p7, %p1130_p5 }
  0x75   : > { %1140 = shalt.err (!%p1137_p8)
}
  0x76   : > { %s1785_s26 = smov 64   ;;  %s1309_s7 = smov 4  }
  0x77   : > { %959 = dma.hbm_to_vmem [thread:$0]  (!%p1497_p4), %s1548_s18, 1024, %s1520_s11, %s1553_s17, %s1785_s26, %s1785_s26, %s1309_s7  }
  0x78   : > { %p1806_p12 = scmp.ne.s32.totalorder %s1803_s25, 0  ;;  %p1807_p0 = scmp.lt.s32.totalorder %s1303_s10, 3 }
  0x79   : > { %p1808_p9 = scmp.ge.s32.totalorder %s1303_s10, 1  ;;  %p1810_p13 = scmp.lt.s32.totalorder %s1303_s10, 2 }
  0x7a   : > { %s945_s19 = scalar_select %p1806_p12, [#allocation4], [#allocation14] }
  0x7b   : > { %p1583_p11 = pnand %p1808_p9, %p1807_p0  ;;  %s274_s23 = sand.u32 1, %s1279_s29  }
  0x7c   : > { %s1870_s19 = smov (!%p1810_p13, %s945_s19), [#allocation18]  ;;  %p284_p1 = scmp.gt.s32.totalorder %s1542_s13, 0 }
  0x7d   : > { %s1809_s15 = scalar_select %p1583_p11, 1, 0 }
  0x7e   : > { %s280_s27 = sld [smem:[%s1870_s19 + %s1866_s21]]  ;;  %s829_s9 = sshll.u32 %s274_s23, 6 }
  0x7f   : > { %s285_s16 = scalar_select %p284_p1, %s1542_s13, 0 }
  0x80   : > { %s278_s11 = scalar_lea.vmem [#allocation8], %s829_s9  ;;  %s1602_s21 = scalar_lea.sflag [#allocation9], %s274_s23 }
  0x81   : > { %s294_s17 = sshll.u32 %s278_s11, 4  ;;  %p1811_p6 = scmp.ne.s32.totalorder %s1804_s14, 0  ;;  %s1595_s17 = int_to_ptr.vmem [resolvable:$true] %s294_s17 }
  0x83   : > { %p1143_p2 = pneg %p1811_p6 }
  0x84   : > { %s830_s5 = sadd.s32 4294967295, %s280_s27 }
  0x85   : > { %p282_p8 = scmp.gt.s32.totalorder %s1542_s13, %s830_s5 }
  0x87   : > { %s1872_s13 = smov (!%p282_p8, %s1542_s13), %s830_s5 }
  0x88   : > { %p286_p4 = scmp.lt.s32.totalorder %s1872_s13, %s285_s16 }
  0x8a   : > { %s1874_s13 = smov (!%p286_p4, %s1872_s13), %s285_s16 }
  0x8b   : > { %s876_s25 = sshll.u32 %s1874_s13, 10  ;;  %s1146_s13 = scalar_lea.hbm %s1769_s4, 1024 }
  0x8c   : > { %s1600_s26 = scalar_lea.hbm %s1769_s4, %s876_s25 }
  0x8d   : > { %s1141_s19 = scalar_lea.hbm %s1600_s26, 1024  ;;  %p1147_p3 = scmp.lt.s32.totalorder %s1600_s26, %s1769_s4 }
  0x8e   : > { %p1142_p7 = scmp.ne.s32.totalorder %s1600_s26, %s1141_s19  ;;  %p1148_p12 = scmp.lt.s32.totalorder %s1146_s13, %s1141_s19 }
  0x90   : > { %p1144_p10 = pnand %p1143_p2, %p1142_p7  ;;  %p1149_p0 = por %p1148_p12, %p1147_p3 }
  0x92   : > { %p1145_p5 = pneg %p1144_p10 }
  0x94   : > { %p1150_p9 = pnand %p1149_p0, %p1145_p5 }
  0x96   : > { %1153 = shalt.err (!%p1150_p9)
}
  0x97   : > { %s1154_s23 = scalar_lea.vmem %s1595_s17, 1024  ;;  %s1310_s11 = smov [#allocation8]  }
  0x98   : > { %p1155_p13 = scmp.ne.s32.totalorder %s1595_s17, %s1154_s23  ;;  %s1159_s25 = sshll.u32 %s1310_s11, 4  ;;  %s1160_s25 = int_to_ptr.vmem [resolvable:$false] %s1159_s25 }
  0x99   : > { %s1161_s18 = scalar_lea.vmem %s1160_s25, 2048  ;;  %p1162_p4 = scmp.lt.s32.totalorder %s1595_s17, %s1160_s25 }
  0x9a   : > { %p1157_p1 = pnand %p1155_p13, %p1143_p2  ;;  %p1163_p7 = scmp.lt.s32.totalorder %s1161_s18, %s1154_s23 }
  0x9c   : > { %p1158_p8 = pneg %p1157_p1  ;;  %p1164_p10 = por %p1163_p7, %p1162_p4 }
  0x9e   : > { %p1165_p11 = pnand %p1164_p10, %p1158_p8 }
  0xa0   : > { %1168 = shalt.err (!%p1165_p11)
}
  0xa1   : > { %s1812_s22 = smov 64   ;;  %p1813_p2 = scmp.ne.s32.totalorder %s1809_s15, 0 }
  0xa2   : > { %966 = dma.hbm_to_vmem [thread:$0]  (!%p1811_p6), %s1600_s26, 1024, %s1595_s17, %s1602_s21, %s1812_s22, %s1812_s22, %s1309_s7  }
  0xa3   : > { %306 = sbr.rel (%p1813_p2) target bundleno = 457 (0x1c9), region = 32  ;;  %s308_s19 = sand.u32 (!%p1813_p2), 1, %s1287_s6  }
  0xa4   : > { %s834_s27 = sshll.u32 (!%p1813_p2), %s308_s19, 6  ;;  %s309_s9 = scalar_lea.sflag (!%p1813_p2), [#allocation6], %s308_s19 }
  0xa5   : > { %s1629_s13 = scalar_lea.vmem (!%p1813_p2), [#allocation5], %s834_s27  ;;  %p1814_p11 = scmp.ne.s32.totalorder (!%p1813_p2), %s1792_s20, 0 }
  0xa8   : > { %1246 = dma.done.wait (%p1814_p11), %s309_s9, 1024  }
  0xa9   : > { %1248 = vsyncadd (%p1814_p11), %s309_s9, 4294966272  ;;  %s317_s14 = sand.u32 1, %s1275_s28   ;;  %p1815_p6 = scmp.ne.s32.totalorder %s1795_s12, 0 }
  0xaa   : > { %s835_s16 = sshll.u32 %s317_s14, 6  ;;  %s318_s26 = scalar_lea.sflag [#allocation9], %s317_s14 }
  0xab   : > { %s1636_s7 = scalar_lea.vmem [#allocation8], %s835_s16 }
  0xac   : > { %1250 = dma.done.wait (%p1815_p6), %s318_s26, 1024  }
  0xad   : > { %1252 = vsyncadd (%p1815_p6), %s318_s26, 4294966272  ;;  %s358_s20 = sand.u32 1, %s1263_s1   ;;  %s361_s15 = sld [smem:[#allocation3 + %s1295_s8]]  ;;  %v1311_v0 = vmov 0.0  }
  0xae   : > { %s836_s17 = sshll.u32 %s358_s20, 5  ;;  %s362_s21 = sld [smem:[#allocation4 + %s1295_s8]] }
  0xaf   : > { %s412_s5 = sld [smem:[#allocation3 + %s1295_s8]]  ;;  %s1648_s23 = scalar_lea.vmem [#allocation10], %s836_s17 }
  0xb0   : > { %408 = vst [vmem:[%s1648_s23] sm:$0xff] %v1311_v0  ;;  %409 = vst [vmem:[%s1648_s23 + $0x8] sm:$0xff] %v1311_v0  ;;  %s413_s12 = sld [smem:[#allocation4 + %s1295_s8]] }
  0xb1   : > { %410 = vst [vmem:[%s1648_s23 + $0x10] sm:$0xff] %v1311_v0  ;;  %411 = vst [vmem:[%s1648_s23 + $0x18] sm:$0xff] %v1311_v0 }
  0xb3   : > { %p366_p5 = scmp.gt.s32.totalorder %s361_s15, 0 }
  0xb4   : > { %s837_s11 = sadd.s32 4294967295, %s362_s21 }
  0xb5   : > { %p364_p3 = scmp.gt.s32.totalorder %s361_s15, %s837_s11  ;;  %p838_p12 = scmp.le.s32.totalorder %s412_s5, 0 }
  0xb6   : > { %s367_s25 = scalar_select %p366_p5, %s361_s15, 0 }
  0xb7   : > { %s1876_s15 = smov (!%p364_p3, %s361_s15), %s837_s11  ;;  %p839_p0 = scmp.gt.s32.totalorder %s413_s12, 0 }
  0xb8   : > { %p368_p9 = scmp.lt.s32.totalorder %s1876_s15, %s367_s25 }
  0xb9   : > { %p416_p13 = pnand %p839_p0, %p838_p12 }
  0xba   : > { %s1878_s15 = smov (!%p368_p9, %s1876_s15), %s367_s25  ;;  %s840_s27 = sshll.u32 (!%p416_p13), %s1295_s8, 5 }
  0xbb   : > { %p370_p1 = scmp.lt.s32.totalorder %s1878_s15, 0  ;;  %419 = sbr.rel (%p416_p13) target bundleno = 430 (0x1ae), region = 48 }
  0xbd   : > { %s1880_s15 = smov (!%p370_p1, %s1878_s15), 0 }
  0xbe   : > { %s372_s19 = scalar_lea.vmem %s1767_s2, %s1880_s15 }
  0xc0   : > { %v1077_v1 = vld [vmem:[%s1636_s7 + $0x38] sm:$0xff]   ;;  %v421_v3 = vlaneseq  ;;  %v1079_v4 = vld [vmem:[%s1636_s7 + $0x30] sm:$0xff]   ;;  %v1081_v6 = vld [vmem:[%s1636_s7 + $0x28] sm:$0xff]   ;;  %v426_v12 = vstv %s840_s27  ;;  %v1312_v20 = vmov 1.0|1.0  }
  0xc1   : > { %v1078_v2 = vld [vmem:[%s1629_s13 + $0x38] sm:$0xff]   ;;  %898 = vmatprep.subr.bf16.mxu0 %v1077_v1  ;;  %v1080_v5 = vld [vmem:[%s1629_s13 + $0x30] sm:$0xff]   ;;  %v1082_v7 = vld [vmem:[%s1629_s13 + $0x28] sm:$0xff]  }
  0xc2   : > { %918 = vmatprep.subr.bf16.mxu1 %v1078_v2  ;;  %899 = vmatpush3.bf16.msra.mxu0 %v1077_v1  ;;  %v422_v8 = vshrl.u32 %v421_v3, 7  ;;  %v1083_v9 = vld [vmem:[%s1636_s7 + $0x20] sm:$0xff]   ;;  %v1085_v13 = vld [vmem:[%s1636_s7 + $0x18] sm:$0xff]   ;;  %v1087_v17 = vld [vmem:[%s1636_s7 + $0x10] sm:$0xff]  }
  0xc3   : > { %919 = vmatpush3.bf16.msra.mxu1 %v1078_v2  ;;  %900 = vmatprep.subr.bf16.mxu0 %v1079_v4  ;;  %v1084_v10 = vld [vmem:[%s1629_s13 + $0x20] sm:$0xff]   ;;  %v1086_v14 = vld [vmem:[%s1629_s13 + $0x18] sm:$0xff]   ;;  %v1088_v19 = vld [vmem:[%s1629_s13 + $0x10] sm:$0xff]  }
  0xc4   : > { %920 = vmatprep.subr.bf16.mxu1 %v1080_v5  ;;  %v423_v11 = vadd.s32 8, %v422_v8  ;;  %v427_v15 = vadd.s32 %v426_v12, %v422_v8  ;;  %v841_v18 = vld [vmem:[%s372_s19] ss:$0 sm:$0xff]  ;;  %v1089_v21 = vld [vmem:[%s1636_s7 + $0x8] sm:$0xff]   ;;  %v424_v22 = vadd.s32 16, %v422_v8  ;;  %v425_v23 = vadd.s32 24, %v422_v8 }
  0xc5   : > { %v1090_v24 = vld [vmem:[%s1629_s13 + $0x8] sm:$0xff]   ;;  %v1091_v25 = vld [vmem:[%s1636_s7] sm:$0xff]   ;;  %v678_v31 = vld [vmem:[%s1648_s23 + $0x10] sm:$0xff] }
  0xc6   : > { %901 = vmatpush3.bf16.msra.mxu0 %v1079_v4  ;;  %v428_v16 = vadd.s32 %v426_v12, %v423_v11  ;;  %vm436_vm0 = vcmp.eq.s32.totalorder %v427_v15, %v841_v18  ;;  %v429_v26 = vadd.s32 %v426_v12, %v424_v22  ;;  %v430_v27 = vadd.s32 %v426_v12, %v425_v23  ;;  %v1092_v28 = vld [vmem:[%s1629_s13] sm:$0xff]   ;;  %v679_v40 = vld [vmem:[%s1648_s23 + $0x18] sm:$0xff]  ;;  %v677_v45 = vld [vmem:[%s1648_s23 + $0x8] sm:$0xff] }
  0xc7   : > { %921 = vmatpush3.bf16.msra.mxu1 %v1080_v5  ;;  %902 = vmatprep.subr.bf16.mxu0 %v1081_v6  ;;  %v676_v35 = vld [vmem:[%s1648_s23] sm:$0xff] }
  0xc8   : > { %922 = vmatprep.subr.bf16.mxu1 %v1082_v7  ;;  %vm437_vm1 = vcmp.eq.s32.totalorder %v428_v16, %v841_v18  ;;  %vm438_vm3 = vcmp.eq.s32.totalorder %v429_v26, %v841_v18  ;;  %vm439_vm4 = vcmp.eq.s32.totalorder %v430_v27, %v841_v18 }
  0xc9   : > { %vm854_vm2 = vmpackc.low %vm437_vm1, %vm436_vm0 }
  0xca   : > { %903 = vmatpush3.bf16.msra.mxu0 %v1081_v6  ;;  %914 = vmatprep.mubr.msk.bf16.mxu0 %vm854_vm2, %v1312_v20  ;;  %vm856_vm5 = vmpackc.low %vm439_vm4, %vm438_vm3 }
  0xcb   : > { %923 = vmatpush3.bf16.msra.mxu1 %v1082_v7  ;;  %904 = vmatprep.subr.bf16.mxu0 %v1083_v9 }
  0xcc   : > { %924 = vmatprep.subr.bf16.mxu1 %v1084_v10  ;;  %934 = vmatprep.mubr.msk.bf16.mxu1 %vm854_vm2, %v1312_v20 }
  0xce   : > { %905 = vmatpush3.bf16.msra.mxu0 %v1083_v9 }
  0xcf   : > { %925 = vmatpush3.bf16.msra.mxu1 %v1084_v10  ;;  %906 = vmatprep.subr.bf16.mxu0 %v1085_v13 }
  0xd0   : > { %926 = vmatprep.subr.bf16.mxu1 %v1086_v14 }
  0xd2   : > { %907 = vmatpush3.bf16.msra.mxu0 %v1085_v13 }
  0xd3   : > { %927 = vmatpush3.bf16.msra.mxu1 %v1086_v14  ;;  %908 = vmatprep.subr.bf16.mxu0 %v1087_v17 }
  0xd4   : > { %928 = vmatprep.subr.bf16.mxu1 %v1088_v19 }
  0xd6   : > { %909 = vmatpush3.bf16.msra.mxu0 %v1087_v17 }
  0xd7   : > { %929 = vmatpush3.bf16.msra.mxu1 %v1088_v19  ;;  %910 = vmatprep.subr.bf16.mxu0 %v1089_v21 }
  0xd8   : > { %930 = vmatprep.subr.bf16.mxu1 %v1090_v24 }
  0xda   : > { %911 = vmatpush3.bf16.msra.mxu0 %v1089_v21 }
  0xdb   : > { %931 = vmatpush3.bf16.msra.mxu1 %v1090_v24  ;;  %912 = vmatprep.subr.bf16.mxu0 %v1091_v25 }
  0xdc   : > { %932 = vmatprep.subr.bf16.mxu1 %v1092_v28 }
  0xde   : > { %913 = vmatpush3.bf16.msra.mxu0 %v1091_v25 }
  0xdf   : > { %933 = vmatpush3.bf16.msra.mxu1 %v1092_v28 }
  0xe1   : > { %915 = vmatmul.mubr.msk.bf16.vlgmr.msra.gmra.mxu0 %vm856_vm5, %v1312_v20 }
  0xe2   : > { %935 = vmatmul.mubr.msk.bf16.vlgmr.msra.gmra.mxu1 %vm856_vm5, %v1312_v20 }
 0x1a1   : > { %v916_v29 = vpop.f32.mrf.mxu0 }
 0x1a2   : > { %v936_v30 = vpop.f32.mrf.mxu1 }
 0x1a3   : > { %v670_v32 = vadd.f32 %v936_v30, %v916_v29  ;;  %v564_v33 = vpop.f32.mrf.mxu0 }
 0x1a4   : > { %v661_v34 = vpop.f32.mrf.mxu1 }
 0x1a5   : > { %v682_v36 = vadd.f32 %v678_v31, %v670_v32  ;;  %v662_v37 = vadd.f32 %v661_v34, %v564_v33  ;;  %v917_v38 = vpop.f32.mrf.mxu0 }
 0x1a6   : > { %v937_v39 = vpop.f32.mrf.mxu1 }
 0x1a7   : > { %686 = vst [vmem:[%s1648_s23 + $0x10] sm:$0xff] %v682_v36  ;;  %v680_v41 = vadd.f32 %v676_v35, %v662_v37  ;;  %v673_v42 = vadd.f32 %v937_v39, %v917_v38  ;;  %v567_v43 = vpop.f32.mrf.mxu0 }
 0x1a8   : > { %v664_v44 = vpop.f32.mrf.mxu1 }
 0x1a9   : > { %684 = vst [vmem:[%s1648_s23] sm:$0xff] %v680_v41  ;;  %v683_v46 = vadd.f32 %v679_v40, %v673_v42  ;;  %v665_v47 = vadd.f32 %v664_v44, %v567_v43 }
 0x1ab   : > { %687 = vst [vmem:[%s1648_s23 + $0x18] sm:$0xff] %v683_v46  ;;  %v681_v48 = vadd.f32 %v677_v45, %v665_v47 }
 0x1ad   : > { %685 = vst [vmem:[%s1648_s23 + $0x8] sm:$0xff] %v681_v48 }
 0x1ae PF: > { %s877_s13 = sshll.u32 %s1295_s8, 9  ;;  %s1816_s7 = sld [smem:[#allocation30_spill]] }
 0x1af   : > { %s702_s21 = sshll.u32 %s1648_s23, 4  ;;  %s1702_s5 = scalar_lea.sflag [#allocation7], %s358_s20  ;;  %s1698_s21 = int_to_ptr.vmem [resolvable:$true] %s702_s21 }
 0x1b0   : > { %s1169_s12 = scalar_lea.vmem %s1698_s21, 512  ;;  %p1818_p4 = scmp.ne.s32.totalorder %s1798_s30, 0 }
 0x1b1   : > { %p1170_p8 = scmp.ne.s32.totalorder %s1698_s21, %s1169_s12  ;;  %s1313_s8 = smov [#allocation10]  }
 0x1b2   : > { %s1173_s11 = sshll.u32 %s1313_s8, 4  ;;  %s1174_s11 = int_to_ptr.vmem [resolvable:$false] %s1173_s11 }
 0x1b3   : > { %p1171_p7 = pnand %p1170_p8, %p1818_p4  ;;  %s1175_s25 = scalar_lea.vmem %s1174_s11, 1024 }
 0x1b4   : > { %s1817_s15 = smov %s1816_s7  ;;  %s1695_s17 = scalar_lea.hbm %s1816_s7, %s877_s13 }
 0x1b5   : > { %p1172_p10 = pneg %p1171_p7  ;;  %p1176_p2 = scmp.lt.s32.totalorder %s1698_s21, %s1174_s11 }
 0x1b6   : > { %p1177_p11 = scmp.lt.s32.totalorder %s1175_s25, %s1169_s12 }
 0x1b8   : > { %p1178_p6 = por %p1177_p11, %p1176_p2 }
 0x1ba   : > { %p1179_p5 = pnand %p1178_p6, %p1172_p10 }
 0x1bc   : > { %1182 = shalt.err (!%p1179_p5)
}
 0x1bd   : > { %s1183_s20 = scalar_lea.hbm %s1695_s17, 512  ;;  %s1187_s22 = scalar_lea.hbm %s1817_s15, 1024 }
 0x1be   : > { %p1184_p3 = scmp.ne.s32.totalorder %s1695_s17, %s1183_s20  ;;  %p1188_p9 = scmp.lt.s32.totalorder %s1695_s17, %s1817_s15 }
 0x1bf   : > { %p1189_p13 = scmp.lt.s32.totalorder %s1187_s22, %s1183_s20 }
 0x1c0   : > { %p1185_p12 = pnand %p1184_p3, %p1818_p4 }
 0x1c1   : > { %p1190_p1 = por %p1189_p13, %p1188_p9 }
 0x1c2   : > { %p1186_p0 = pneg %p1185_p12 }
 0x1c4   : > { %p1191_p8 = pnand %p1190_p1, %p1186_p0 }
 0x1c6   : > { %1194 = shalt.err (!%p1191_p8)
}
 0x1c7   : > { %s1314_s9 = smov 128   ;;  %s1315_s14 = smov 8  }
 0x1c8   : > { %950 = dma.vmem_to_hbm [thread:$0]  (%p1818_p4), %s1698_s21, 512, %s1695_s17, %s1702_s5, %s1314_s9, %s1314_s9, %s1315_s14  }
 0x1c9 PF: > { %s717_s13 = sand.u32 1, %s1259_s0   ;;  %p1819_p7 = scmp.ne.s32.totalorder %s1801_s24, 0 }
 0x1ca   : > { %p1820_p10 = scmp.ge.s32.totalorder %s1303_s10, 2  ;;  %s718_s16 = scalar_lea.sflag [#allocation7], %s717_s13 }
 0x1cc   : > { %p968_p2 = pnand %p1820_p10, %p1819_p7 }
 0x1ce   : > { %p969_p11 = pneg %p968_p2 }
 0x1d0   : > { %1254 = dma.done.wait (%p969_p11), %s718_s16, 512  }
 0x1d1   : > { %1256 = vsyncadd (%p969_p11), %s718_s16, 4294966784  ;;  %s32_s10 = sadd.s32 1, %s1303_s10   ;;  %s1821_s26 = sld [smem:[#allocation23_spill]] }
 0x1d2   : > { %p29_p6 = scmp.ge.s32.totalorder %s32_s10, 4   ;;  %s1822_s7 = sld [smem:[#allocation28_spill]] }
 0x1d3   : > { %s1823_s30 = sld [smem:[#allocation29_spill]]  ;;  %s1828_s0 = smov %s1263_s1 }
 0x1d4   : > { %s1824_s17 = sld [smem:[#allocation24_spill]]  ;;  %s1831_s27 = smov %s1275_s28 }
 0x1d5   : > { %s1825_s21 = sld [smem:[#allocation27_spill]]  ;;  %s1832_s28 = smov %s1279_s29 }
 0x1d6   : > { %s1826_s8 = sld [smem:[#allocation25_spill]] }
 0x1d7   : > { %s1827_s9 = sld [smem:[#allocation26_spill]]  ;;  %s1829_s1 = smov %s1821_s26 }
 0x1d8   : > { %s1830_s26 = smov %s1822_s7  ;;  %31 = sbr.rel (!%p29_p6) target bundleno = 27 (0x1b), region = 101 }
 0x1d9   : > { %s1833_s29 = smov %s1823_s30  ;;  %s1834_s30 = smov %s1287_s6 }
 0x1da   : > { %s1835_s6 = smov %s1824_s17 }
 0x1db   : > { %s1836_s7 = smov %s1825_s21 }
 0x1dd   :  { %723 = vsyncpa [#allocation6], 1 }
 0x1de   :  { %725 = vsyncpa [#allocation6 + $0x1], 1 }
 0x1df   :  { %726 = vsyncpa [#allocation9], 1 }
 0x1e0   :  { %728 = vsyncpa [#allocation9 + $0x1], 1 }
 0x1e1   :  { %729 = vsyncpa [#allocation7], 1 }
 0x1e2   :  { %731 = vsyncpa [#allocation7 + $0x1], 1 }

</bundles_post_ra>
